<compile_context>
chip_gen: v6e
topology: v6e:2x2x1
jax: 0.10.0
libtpu: 0.0.40
codegen_flags: <defaults>
</compile_context>

<pallas_src>
import math

import jax
import jax.numpy as jnp
from jax import lax
from jax.experimental import pallas as pl
from jax.experimental.pallas import tpu as pltpu


# ---------------------------------------------------------------------------
# Kernels
# ---------------------------------------------------------------------------
def _decode_kernel(x_ref, w_ref, b_ref, o_ref):
    """One vocab block: logits = x @ W_tile^T + b_tile, softmax over seq (dim 0)."""
    x = x_ref[...]                                   # (seq, d_model), resident
    w = w_ref[...].astype(x.dtype)                   # (tn, d_model) streamed (bf16 ok), upcast in VMEM
    logits = lax.dot_general(                        # x @ w.T on the MXU, f32 accumulation
        x, w,
        dimension_numbers=(((1,), (1,)), ((), ())),
        preferred_element_type=jnp.float32,
    ) + b_ref[...].astype(jnp.float32)
    # Softmax over dim=0 (seq axis), matching nn.Softmax(dim=0).  seq is fully
    # resident in every block, so this is a plain within-block sublane reduce.
    m = jnp.max(logits, axis=0, keepdims=True)
    e = jnp.exp(logits - m)
    s = jnp.sum(e, axis=0, keepdims=True)
    o_ref[...] = (e / s).astype(o_ref.dtype)         # exact divide: once per vocab block


def _decode_kernel_ktiled(x_ref, w_ref, b_ref, o_ref, acc_ref):
    """Fallback when a full (tn, d_model) weight slab does not fit VMEM."""
    k = pl.program_id(1)

    @pl.when(k == 0)
    def _():
        acc_ref[...] = jnp.zeros_like(acc_ref)

    x = x_ref[...]
    w = w_ref[...].astype(x.dtype)
    acc_ref[...] += lax.dot_general(
        x, w,
        dimension_numbers=(((1,), (1,)), ((), ())),
        preferred_element_type=jnp.float32,
    )

    @pl.when(k == pl.num_programs(1) - 1)
    def _():
        logits = acc_ref[...] + b_ref[...].astype(jnp.float32)
        m = jnp.max(logits, axis=0, keepdims=True)
        e = jnp.exp(logits - m)
        s = jnp.sum(e, axis=0, keepdims=True)
        o_ref[...] = (e / s).astype(o_ref.dtype)


# ---------------------------------------------------------------------------
# Wrapper
# ---------------------------------------------------------------------------
def _vmem_capacity_bytes():
    try:
        cap = getattr(pltpu.get_tpu_info(), "vmem_capacity_bytes", None)
        if cap:
            return int(cap)
    except Exception:
        pass
    return 64 * 1024 * 1024  # conservative default (v7x per-TensorCore VMEM)


def _tn_candidates(vocab):
    """Lane-dense (multiple-of-128) vocab tiles that evenly divide vocab, biggest first,
    preferring >= 2 blocks so both v7x TensorCores get balanced weight streams."""
    cands = [c for c in range(128, vocab + 1, 128) if vocab % c == 0]
    if not cands:
        # TODO(synk): vocab not a multiple of 128 -> pad vocab at model-load time; for
        # now fall back to a single full-extent block (legal, lane-masked stores if <128).
        return [vocab]
    multi = sorted([c for c in cands if vocab // c >= 2], reverse=True)
    return multi + ([vocab] if vocab in cands else [])


def token_decoder(x, weight, bias, *, out_dtype=None):
    """x: (seq, d_model); weight: (vocab, d_model) [PyTorch nn.Linear layout]; bias: (vocab,)."""
    seq, d_model = x.shape
    vocab, dm2 = weight.shape
    assert dm2 == d_model, "weight must be (vocab, d_model)"
    assert bias.shape == (vocab,)
    out_dtype = out_dtype or x.dtype

    w_bytes = jnp.dtype(weight.dtype).itemsize
    x_bytes = jnp.dtype(x.dtype).itemsize
    o_bytes = jnp.dtype(out_dtype).itemsize

    # Per-generation VMEM budget: ~96 MiB on v5e/v6e (128 MiB), ~48 MiB on v7x (64 MiB).
    vmem_limit = (_vmem_capacity_bytes() * 3) // 4
    budget = vmem_limit - (8 << 20)  # headroom for compiler scratch

    def footprint(tn_, tk_):
        wt = 2 * tn_ * tk_ * w_bytes                       # double-buffered weight tile
        wt += tn_ * tk_ * 4 if w_bytes < 4 else 0          # in-kernel f32 upcast temp
        xt = seq * tk_ * x_bytes * (1 if tk_ == d_model else 2)
        ot = 2 * seq * tn_ * o_bytes                       # double-buffered output tile
        at = 0 if tk_ == d_model else seq * tn_ * 4        # f32 accumulator (fallback)
        return wt + xt + ot + at + 4 * tn_                 # + bias tile

    b2 = bias.reshape(1, vocab)                            # broadcastable over seq axis

    cost = pl.CostEstimate(
        flops=2 * seq * d_model * vocab,
        transcendentals=seq * vocab,
        bytes_accessed=(weight.size * w_bytes + x.size * x_bytes
                        + bias.size * jnp.dtype(bias.dtype).itemsize
                        + seq * vocab * o_bytes),
    )

    tn = next((c for c in _tn_candidates(vocab) if footprint(c, d_model) <= budget), None)

    if tn is not None:
        # Preferred path: K collapsed -> one contiguous (tn, d_model) weight DMA per step.
        return pl.pallas_call(
            _decode_kernel,
            out_shape=jax.ShapeDtypeStruct((seq, vocab), out_dtype),
            grid_spec=pltpu.PrefetchScalarGridSpec(
                num_scalar_prefetch=0,
                grid=(vocab // tn,),
                in_specs=[
                    pl.BlockSpec((seq, d_model), lambda j: (0, 0)),   # x: DMA'd once
                    pl.BlockSpec((tn, d_model), lambda j: (j, 0)),    # weight slab (contiguous)
                    pl.BlockSpec((1, tn), lambda j: (0, j)),          # bias
                ],
                out_specs=pl.BlockSpec((seq, tn), lambda j: (0, j)),  # lane-dense output
            ),
            compiler_params=pltpu.CompilerParams(
                dimension_semantics=("parallel",),
                vmem_limit_bytes=vmem_limit,
            ),
            cost_estimate=cost,
        )(x, weight, b2)

    # Fallback: d_model too large for a resident weight slab -> tile K with accumulator.
    tk = next((c for c in (1024, 512, 256, 128) if d_model % c == 0), d_model)
    cands = _tn_candidates(vocab)
    tn = next((c for c in cands if footprint(c, tk) <= budget), min(cands))
    return pl.pallas_call(
        _decode_kernel_ktiled,
        out_shape=jax.ShapeDtypeStruct((seq, vocab), out_dtype),
        grid_spec=pltpu.PrefetchScalarGridSpec(
            num_scalar_prefetch=0,
            grid=(vocab // tn, d_model // tk),
            in_specs=[
                pl.BlockSpec((seq, tk), lambda j, k: (0, k)),
                pl.BlockSpec((tn, tk), lambda j, k: (j, k)),
                pl.BlockSpec((1, tn), lambda j, k: (0, j)),
            ],
            out_specs=pl.BlockSpec((seq, tn), lambda j, k: (0, j)),
            scratch_shapes=[pltpu.VMEM((seq, tn), jnp.float32)],
        ),
        compiler_params=pltpu.CompilerParams(
            dimension_semantics=("parallel", "arbitrary"),
            vmem_limit_bytes=vmem_limit,
        ),
        cost_estimate=cost,
    )(x, weight, b2)


def reference(x, weight_f32, bias):
    logits = x @ weight_f32.T + bias
    m = jnp.max(logits, axis=0, keepdims=True)
    e = jnp.exp(logits - m)
    return e / jnp.sum(e, axis=0, keepdims=True)


if __name__ == "__main__":
    # Small shapes that still exercise the vocab grid: tn=384 -> grid=(2,)
    seq, d_model, vocab = 8, 384, 768

    key = jax.random.PRNGKey(0)
    kx, kw, kb = jax.random.split(key, 3)

    # PyTorch nn.Linear-style parameters: W (vocab, d_model), b (vocab,)
    bound = 1.0 / math.sqrt(d_model)
    weight_f32 = jax.random.uniform(kw, (vocab, d_model), jnp.float32, -bound, bound)
    bias = jax.random.uniform(kb, (vocab,), jnp.float32, -bound, bound)
    x = jax.random.normal(kx, (seq, d_model), jnp.float32)

    # Production path (perf feedback): weights cast ONCE at "model load" to bf16 and
    # streamed from HBM in bf16; kernel upcasts in VMEM and accumulates in f32.
    weight_bf16 = weight_f32.astype(jnp.bfloat16)
    out_bf16w = jax.block_until_ready(token_decoder(x, weight_bf16, bias))
    ref_bf16w = reference(x, weight_bf16.astype(jnp.float32), bias)
    assert out_bf16w.shape == (seq, vocab)
    assert jnp.allclose(out_bf16w, ref_bf16w, atol=2e-3, rtol=2e-3), \
        "mismatch vs reference (bf16 weights)"

    # Exactness check against the plain f32 module semantics.
    out_f32w = jax.block_until_ready(token_decoder(x, weight_f32, bias))
    ref_f32w = reference(x, weight_f32, bias)
    assert jnp.allclose(out_f32w, ref_f32w, atol=2e-3, rtol=2e-3), \
        "mismatch vs reference (f32 weights)"

    print("KERNEL_OK")
</pallas_src>

<mosaic_0001>
module attributes {stable_mosaic.version = 11 : i64} {
  func.func @_decode_kernel(%arg0: i32, %arg1: memref<8x384xf32, #tpu.memory_space<vmem>>, %arg2: memref<384x384xbf16, #tpu.memory_space<vmem>>, %arg3: memref<1x384xf32, #tpu.memory_space<vmem>>, %arg4: memref<8x384xf32, #tpu.memory_space<vmem>>) attributes {dimension_semantics = [#tpu.dimension_semantics<parallel>], iteration_bounds = array<i64: 2>, scalar_prefetch = 0 : i64, scratch_operands = 0 : i64, tpu.core_type = #tpu.core_type<tc>, window_params = [{pipeline_mode = #tpu.pipeline_mode<synchronous>, transform_indices = @transform_0, window_bounds = array<i64: 8, 384>}, {transform_indices = @transform_1, window_bounds = array<i64: 384, 384>}, {transform_indices = @transform_2, window_bounds = array<i64: 1, 384>}, {transform_indices = @transform_3, window_bounds = array<i64: 8, 384>}]} {
    %c0 = arith.constant 0 : index
    %c0_0 = arith.constant 0 : index
    %0 = vector.load %arg1[%c0, %c0_0] : memref<8x384xf32, #tpu.memory_space<vmem>>, vector<8x384xf32>
    %c0_1 = arith.constant 0 : index
    %c0_2 = arith.constant 0 : index
    %1 = vector.load %arg2[%c0_1, %c0_2] : memref<384x384xbf16, #tpu.memory_space<vmem>>, vector<384x384xbf16>
    %2 = arith.extf %1 : vector<384x384xbf16> to vector<384x384xf32>
    %cst = arith.constant dense<0.000000e+00> : vector<8x384xf32>
    %3 = tpu.matmul %0, %2, %cst {dimension_numbers = #tpu.dot_dimension_numbers<[1], [1], [0], [0], [0, 0, 1, 0], [], []>} : vector<8x384xf32>, vector<384x384xf32>, vector<8x384xf32> -> vector<8x384xf32>
    %c0_3 = arith.constant 0 : index
    %c0_4 = arith.constant 0 : index
    %4 = vector.load %arg3[%c0_3, %c0_4] : memref<1x384xf32, #tpu.memory_space<vmem>>, vector<1x384xf32>
    %5 = vector.broadcast %4 : vector<1x384xf32> to vector<8x384xf32>
    %6 = arith.addf %3, %5 : vector<8x384xf32>
    %cst_5 = arith.constant dense<0xFF800000> : vector<384xf32>
    %7 = vector.multi_reduction <maximumf>, %6, %cst_5 [0] : vector<8x384xf32> to vector<384xf32>
    %8 = vector.shape_cast %7 : vector<384xf32> to vector<1x384xf32>
    %9 = vector.broadcast %8 : vector<1x384xf32> to vector<8x384xf32>
    %10 = arith.subf %6, %9 : vector<8x384xf32>
    %11 = math.exp %10 : vector<8x384xf32>
    %cst_6 = arith.constant dense<0.000000e+00> : vector<384xf32>
    %12 = vector.multi_reduction <add>, %11, %cst_6 [0] : vector<8x384xf32> to vector<384xf32>
    %13 = vector.shape_cast %12 : vector<384xf32> to vector<1x384xf32>
    %14 = vector.broadcast %13 : vector<1x384xf32> to vector<8x384xf32>
    %15 = arith.divf %11, %14 : vector<8x384xf32>
    %c0_7 = arith.constant 0 : index
    %c0_8 = arith.constant 0 : index
    %16 = vector.load %arg4[%c0_7, %c0_8] : memref<8x384xf32, #tpu.memory_space<vmem>>, vector<8x384xf32>
    tpu.vector_store %arg4[%c0_7, %c0_8], %15 {strides = array<i32>} : memref<8x384xf32, #tpu.memory_space<vmem>>, vector<8x384xf32>,
    return
  }
  func.func @transform_0(%arg0: i32) -> (i32, i32) {
    %c0_i32 = arith.constant 0 : i32
    %c0_i32_0 = arith.constant 0 : i32
    %c0_i32_1 = arith.constant 0 : i32
    return %c0_i32, %c0_i32_0 : i32, i32
  }
  func.func @transform_1(%arg0: i32) -> (i32, i32) {
    %c0_i32 = arith.constant 0 : i32
    %c0_i32_0 = arith.constant 0 : i32
    return %arg0, %c0_i32 : i32, i32
  }
  func.func @transform_2(%arg0: i32) -> (i32, i32) {
    %c0_i32 = arith.constant 0 : i32
    %c0_i32_0 = arith.constant 0 : i32
    return %c0_i32, %arg0 : i32, i32
  }
  func.func @transform_3(%arg0: i32) -> (i32, i32) {
    %c0_i32 = arith.constant 0 : i32
    %c0_i32_0 = arith.constant 0 : i32
    return %c0_i32, %arg0 : i32, i32
  }
}

</mosaic_0001>

<bundles_post_ra>
// kernel: tpu_custom_call.1
= control target key start
LH: loop header
LB: loop body
LE: loop exit
PB: predicated region body
PF: predicated region fallthrough
CT: control target
= control target key end

     0   :  { %8 = vsyncpa [#allocation3], 0  ;;  %s1612_s0 = inlined_call_operand.hbm [shape: f32[8,384], index: 0, kind: input, shape index: {}]   ;;  %s1613_s1 = inlined_call_operand.hbm [shape: bf16[768,384], index: 1, kind: input, shape index: {}]   ;;  %s1614_s2 = inlined_call_operand.hbm [shape: f32[1,768], index: 2, kind: input, shape index: {}]   ;;  %s1615_s3 = inlined_call_operand.hbm [shape: f32[8,768], index: 3, kind: output, shape index: {}]  }
   0x1   :  { %9 = vsyncpa [#allocation6], 0 }
   0x2   :  { %11 = vsyncpa [#allocation6 + $0x1], 0 }
   0x3   :  { %12 = vsyncpa [#allocation4], 0 }
   0x4   :  { %14 = vsyncpa [#allocation4 + $0x1], 0  ;;  %s1318_s12 = smov 0   ;;  %s1320_s13 = smov 0  }
   0x5   :  { %s1322_s14 = smov 0   ;;  %s1324_s15 = smov 0  }
   0x6 LB: > { %s1339_s16 = sadd.s32 1, %s1288_s15   ;;  %s48_s17 = sadd.s32 1, %s1284_s14  ;;  %s1288_s15 = sphi %s1324_s15, %s1637_s15   ;;  %s1284_s14 = sphi %s1322_s14, %s1636_s14   ;;  %s1280_s13 = sphi %s1320_s13, %s1635_s13   ;;  %s1276_s12 = sphi %s1318_s12, %s1634_s12  }
   0x7   : > { %s45_s18 = ssub.s32 %s1288_s15, %s1339_s16  ;;  %p55_p0 = scmp.ne.s32.totalorder %s1284_s14, %s1280_s13 }
   0x8   : > { %p46_p1 = scmp.eq.s32.totalorder %s45_s18, 0  ;;  %p56_p2 = scmp.eq.s32.totalorder %s1288_s15, 0 }
   0x9   : > { %p1085_p4 = scmp.lt.s32.totalorder %s1288_s15, 2  ;;  %s148_s20 = sand.u32 1, %s1288_s15  }
   0xa   : > { %s1350_s19 = scalar_select %p46_p1, %s1284_s14, %s48_s17  }
   0xb   : > { %p57_p5 = por %p56_p2, %p55_p0  ;;  %s150_s21 = sand.u32 1, %s1284_s14  }
   0xc   : > { %s1053_s22 = smul.u32 576, %s150_s21  ;;  %s1371_s30 = scalar_lea.sflag [#allocation6], %s148_s20 }
   0xd   : > { %p1359_p6 = pnand %p1085_p4, %p57_p5  ;;  %s1086_s24 = smul.u32 9216, %s1288_s15 }
   0xe   : > { %s152_s28 = scalar_lea.vmem [#allocation5], %s1053_s22  ;;  %s1143_s7 = scalar_lea.hbm %s1613_s1, 18432 }
   0xf   : > { %s1367_s27 = scalar_lea.hbm %s1613_s1, %s1086_s24  ;;  %s160_s29 = sshll.u32 %s152_s28, 4  ;;  %s1369_s29 = int_to_ptr.vmem [resolvable:$true] %s160_s29 }
  0x10   : > { %s1138_s4 = scalar_lea.hbm %s1367_s27, 9216  ;;  %p1617_p8 = pneg %p1359_p6 }
  0x11   : > { %p1139_p7 = scmp.ne.s32.totalorder %s1367_s27, %s1138_s4  ;;  %p1144_p11 = scmp.lt.s32.totalorder %s1367_s27, %s1613_s1 }
  0x12   : > { %p1145_p12 = scmp.lt.s32.totalorder %s1143_s7, %s1138_s4 }
  0x13   : > { %p1141_p9 = pnand %p1617_p8, %p1139_p7 }
  0x14   : > { %p1146_p13 = por %p1145_p12, %p1144_p11 }
  0x15   : > { %p1142_p10 = pneg %p1141_p9 }
  0x17   : > { %p1147_p1 = pnand %p1146_p13, %p1142_p10 }
  0x19   : > { %1150 = shalt.err (!%p1147_p1)
}
  0x1a   : > { %s1151_s10 = scalar_lea.vmem %s1369_s29, 9216  ;;  %s1290_s11 = smov [#allocation5]  }
  0x1b   : > { %p1152_p2 = scmp.ne.s32.totalorder %s1369_s29, %s1151_s10  ;;  %s1156_s17 = sshll.u32 %s1290_s11, 4  ;;  %s1157_s17 = int_to_ptr.vmem [resolvable:$false] %s1156_s17 }
  0x1c   : > { %s1158_s18 = scalar_lea.vmem %s1157_s17, 18432  ;;  %p1159_p7 = scmp.lt.s32.totalorder %s1369_s29, %s1157_s17 }
  0x1d   : > { %p1154_p4 = pnand %p1152_p2, %p1617_p8  ;;  %p1160_p9 = scmp.lt.s32.totalorder %s1158_s18, %s1151_s10 }
  0x1f   : > { %p1155_p5 = pneg %p1154_p4  ;;  %p1161_p3 = por %p1160_p9, %p1159_p7 }
  0x21   : > { %p1162_p11 = pnand %p1161_p3, %p1155_p5 }
  0x23   : > { %1165 = shalt.err (!%p1162_p11)
}
  0x24   : > { %s1291_s20 = smov 192   ;;  %s1292_s22 = smov 12  }
  0x25   : > { %1076 = dma.hbm_to_vmem [thread:$0]  (!%p1359_p6), %s1367_s27, 9216, %s1369_s29, %s1371_s30, %s1291_s20, %s1291_s20, %s1292_s22  }
  0x26   : > { %s1399_s24 = sadd.s32 4294967295, %s1288_s15   ;;  %s954_s25 = sadd.s32 4294967294, %s1288_s15  }
  0x27   : > { %p61_p3 = scmp.ne.s32.totalorder %s1280_s13, %s1276_s12  ;;  %p1616_p10 = scmp.eq.s32.totalorder %s1399_s24, 0 }
  0x28   : > { %p111_p12 = scmp.eq.s32.totalorder %s1399_s24, 1  ;;  %p117_p13 = scmp.eq.s32.totalorder %s954_s25, 1 }
  0x29   : > { %p1408_p1 = por %p1616_p10, %p61_p3  ;;  %p955_p2 = scmp.ge.s32.totalorder %s1288_s15, 1 }
  0x2a   : > { %p1416_p4 = por %p111_p12, %p55_p0  ;;  %p1420_p5 = por %p117_p13, %p61_p3 }
  0x2b   : > { %s1621_s26 = scalar_select %p1408_p1, 1, 0 }
  0x2c   : > { %s1622_s27 = scalar_select %p1416_p4, 1, 0 }
  0x2d   : > { %s1623_s28 = scalar_select %p1420_p5, 1, 0 }
  0x2e   : > { %p124_p7 = scmp.lt.s32.totalorder %s1288_s15, 3  ;;  %s153_s29 = smul.u32 48, %s1288_s15 }
  0x2f   : > { %s1293_s5 = smov [#allocation2]   ;;  %s1055_s7 = smul.u32 3, %s150_s21 }
  0x30   : > { %p1426_p9 = pnand %p955_p2, %p124_p7  ;;  %s137_s6 = sshll.u32 %s1293_s5, 4  ;;  %s138_s6 = int_to_ptr.vmem [resolvable:$true] %s137_s6 }
  0x31   : > { %s174_s9 = scalar_lea.vmem [#allocation7], %s1055_s7  ;;  %s1443_s18 = scalar_lea.hbm %s1614_s2, %s153_s29 }
  0x32   : > { %p1069_p0 = pneg %p1426_p9  ;;  %s182_s10 = sshll.u32 %s174_s9, 4  ;;  %s1445_s10 = int_to_ptr.vmem [resolvable:$true] %s182_s10 }
  0x33   : > { %s1177_s21 = scalar_lea.vmem %s138_s6, 384  ;;  %p1185_p7 = scmp.lt.s32.totalorder %s138_s6, %s138_s6 }
  0x34   : > { %p1436_p11 = pnand %p1069_p0, %p1616_p10  ;;  %p1178_p12 = scmp.ne.s32.totalorder %s138_s6, %s1177_s21 }
  0x35   : > { %p1186_p0 = scmp.lt.s32.totalorder %s1177_s21, %s1177_s21 }
  0x36   : > { %p1168_p3 = pneg %p1436_p11 }
  0x37   : > { %p1187_p10 = por %p1186_p0, %p1185_p7 }
  0x38   : > { %p1180_p13 = pnand %p1178_p12, %p1168_p3 }
  0x3a   : > { %p1181_p2 = pneg %p1180_p13 }
  0x3c   : > { %p1188_p8 = pnand %p1187_p10, %p1181_p2 }
  0x3e   : > { %1191 = shalt.err (!%p1188_p8)
}
  0x3f   : > { %1072 = dma.hbm_to_vmem [thread:$0]  (!%p1436_p11), %s1612_s0, 384, %s138_s6, [#allocation3]  }
  0x40   : > { %s1192_s25 = scalar_lea.hbm %s1443_s18, 48  ;;  %p1626_p3 = pneg %p1359_p6 }
  0x41   : > { %p1193_p5 = scmp.ne.s32.totalorder %s1443_s18, %s1192_s25  ;;  %s1197_s7 = scalar_lea.hbm %s1614_s2, 96 }
  0x42   : > { %p1198_p8 = scmp.lt.s32.totalorder %s1443_s18, %s1614_s2  ;;  %p1199_p10 = scmp.lt.s32.totalorder %s1197_s7, %s1192_s25 }
  0x43   : > { %p1195_p12 = pnand %p1193_p5, %p1626_p3 }
  0x44   : > { %p1200_p2 = por %p1199_p10, %p1198_p8 }
  0x45   : > { %p1196_p13 = pneg %p1195_p12 }
  0x47   : > { %p1201_p7 = pnand %p1200_p2, %p1196_p13 }
  0x49   : > { %1204 = shalt.err (!%p1201_p7)
}
  0x4a   : > { %s1205_s6 = scalar_lea.vmem %s1445_s10, 48  ;;  %p1627_p5 = pmov %p1626_p3 }
  0x4b   : > { %p1206_p11 = scmp.ne.s32.totalorder %s1445_s10, %s1205_s6  ;;  %s1294_s11 = smov [#allocation7]  }
  0x4c   : > { %s1210_s17 = sshll.u32 %s1294_s11, 4  ;;  %s1211_s17 = int_to_ptr.vmem [resolvable:$false] %s1210_s17 }
  0x4d   : > { %p1208_p0 = pnand %p1206_p11, %p1627_p5  ;;  %s1212_s21 = scalar_lea.vmem %s1211_s17, 96 }
  0x4e   : > { %p1213_p12 = scmp.lt.s32.totalorder %s1445_s10, %s1211_s17  ;;  %p1214_p4 = scmp.lt.s32.totalorder %s1212_s21, %s1205_s6 }
  0x4f   : > { %p1209_p3 = pneg %p1208_p0 }
  0x50   : > { %p1215_p1 = por %p1214_p4, %p1213_p12 }
  0x52   : > { %p1216_p8 = pnand %p1215_p1, %p1209_p3 }
  0x54   : > { %1219 = shalt.err (!%p1216_p8)
}
  0x55   : > { %1079 = dma.hbm_to_vmem [thread:$0]  (!%p1359_p6), %s1443_s18, 48, %s1445_s10, %s1371_s30  }
  0x56   : > { %191 = sbr.rel (%p1426_p9) target bundleno = 558 (0x22e), region = 32  ;;  %p1628_p13 = scmp.eq.s32.totalorder (!%p1426_p9), %s1399_s24, 0 }
  0x5b   : > { %1263 = dma.done.wait (%p1628_p13), [#allocation3], 384   ;;  %p1629_p10 = pmov %p1628_p13 }
  0x5c   : > { %s197_s20 = sand.u32 1, %s1399_s24   ;;  %s1485_s22 = sand.u32 1, %s1280_s13  }
  0x5d   : > { %1265 = vsyncadd (%p1629_p10), [#allocation3], 4294966912  ;;  %s1056_s23 = smul.u32 576, %s1485_s22  ;;  %s198_s25 = scalar_lea.sflag [#allocation6], %s197_s20 }
  0x5e   : > { %p1630_p6 = scmp.ne.s32.totalorder %s1621_s26, 0 }
  0x5f   : > { %s1488_s29 = scalar_lea.vmem [#allocation5], %s1056_s23 }
  0x60   : > { %1267 = dma.done.wait (%p1630_p6), %s198_s25, 9264  }
  0x61   : > { %1269 = vsyncadd (%p1630_p6), %s198_s25, 4294958032  ;;  %v274_v0 = vld [vmem:[%s1488_s29 + $0xb4] sm:$0xff]  ;;  %v272_v1 = vld [vmem:[%s1488_s29 + $0xa8] sm:$0xff]  ;;  %vm1296_vm0 = vmmov 0   ;;  %s1057_s30 = smul.u32 3, %s1485_s22  ;;  %s838_s6 = scalar_lea.sflag [#allocation4], %s1485_s22 }
  0x62   : > { %v386_v2 = vunpack.c.h.bf16 %v274_v0  ;;  %v385_v3 = vunpack.c.l.bf16 %v274_v0  ;;  %v383_v4 = vunpack.c.h.bf16 %v272_v1  ;;  %v270_v5 = vld [vmem:[%s1488_s29 + $0x9c] sm:$0xff]  ;;  %v382_v6 = vunpack.c.l.bf16 %v272_v1  ;;  %v268_v9 = vld [vmem:[%s1488_s29 + $0x90] sm:$0xff]  ;;  %v303_v16 = vld [vmem:[%s1488_s29 + $0x158] ss:$12 sps:$4 sm:$0xff]   ;;  %s1058_s4 = smul.u32 24, %s1485_s22  ;;  %p1631_p4 = scmp.ne.s32.totalorder %s1622_s27, 0 }
  0x63   : > { %v380_v7 = vunpack.c.h.bf16 %v270_v5  ;;  %v307_v8 = vld [vmem:[%s1488_s29 + $0x170] ss:$12 sps:$4 sm:$0xff]   ;;  %v379_v11 = vunpack.c.l.bf16 %v270_v5  ;;  %v377_v13 = vunpack.c.h.bf16 %v268_v9  ;;  %v266_v17 = vld [vmem:[%s1488_s29 + $0x84] sm:$0xff]  ;;  %v376_v19 = vunpack.c.l.bf16 %v268_v9  ;;  %v299_v30 = vld [vmem:[%s1488_s29 + $0x140] ss:$12 sps:$4 sm:$0xff]   ;;  %s210_s26 = scalar_lea.vmem [#allocation7], %s1057_s30 }
  0x64   : > { %501 = vmatprep.subr.mxu0 %v386_v2  ;;  %v275_v10 = vld [vmem:[%s1488_s29 + $0xb0] ss:$12 sps:$4 sm:$0xff]   ;;  %v435_v12 = vunpack.c.h.bf16 %v307_v8  ;;  %v432_v15 = vunpack.c.l.bf16 %v307_v8  ;;  %v429_v20 = vunpack.c.h.bf16 %v303_v16  ;;  %v271_v21 = vld [vmem:[%s1488_s29 + $0x98] ss:$12 sps:$4 sm:$0xff]   ;;  %v374_v22 = vunpack.c.h.bf16 %v266_v17  ;;  %v267_v35 = vld [vmem:[%s1488_s29 + $0x80] ss:$12 sps:$4 sm:$0xff]  }
  0x65   : > { %502 = vmatpush1.xpose.msra.mxu0 %v385_v3  ;;  %v387_v14 = vunpack.c.h.bf16 %v275_v10  ;;  %v384_v18 = vunpack.c.l.bf16 %v275_v10  ;;  %v264_v23 = vld [vmem:[%s1488_s29 + $0x78] sm:$0xff]  ;;  %v381_v24 = vunpack.c.h.bf16 %v271_v21  ;;  %v373_v25 = vunpack.c.l.bf16 %v266_v17  ;;  %v1506_v28 = vld [vmem:[#allocation2 + $0x8] sm:$0xff]  ;;  %v260_v37 = vld [vmem:[%s1488_s29 + $0x60] sm:$0xff]  ;;  %s237_s10 = scalar_lea.vmem [#allocation8], %s1058_s4  ;;  %s966_s18 = smul.u32 384, %s1399_s24 }
  0x66   : > { %503 = vmatprep.subr.mxu0 %v383_v4  ;;  %967 = vmatprep.subr.mxu1 %v435_v12  ;;  %v426_v26 = vunpack.c.l.bf16 %v303_v16  ;;  %v1504_v27 = vld [vmem:[#allocation2 + $0x10] sm:$0xff]  ;;  %v371_v29 = vunpack.c.h.bf16 %v264_v23  ;;  %v262_v31 = vld [vmem:[%s1488_s29 + $0x6c] sm:$0xff]  ;;  %v378_v32 = vunpack.c.l.bf16 %v271_v21  ;;  %v370_v33 = vunpack.c.l.bf16 %v264_v23  ;;  %v295_v42 = vld [vmem:[%s1488_s29 + $0x128] ss:$12 sps:$4 sm:$0xff]   ;;  %s852_s5 = sshll.u32 %s237_s10, 4  ;;  %s1297_s17 = smov [#allocation8]   ;;  %s853_s5 = int_to_ptr.vmem [resolvable:$true] %s852_s5 }
  0x67   : > { %968 = vmatpush3.xpose.msra.mxu1 %v387_v14  ;;  %999 = vmatprep.mubr.f32.mxu1 %v1504_v27  ;;  %v423_v34 = vunpack.c.h.bf16 %v299_v30  ;;  %v368_v36 = vunpack.c.h.bf16 %v262_v31  ;;  %v375_v38 = vunpack.c.h.bf16 %v267_v35  ;;  %v367_v39 = vunpack.c.l.bf16 %v262_v31  ;;  %v258_v43 = vld [vmem:[%s1488_s29 + $0x54] sm:$0xff]  ;;  %v256_v49 = vld [vmem:[%s1488_s29 + $0x48] sm:$0xff]  ;;  %v291_v54 = vld [vmem:[%s1488_s29 + $0x110] ss:$12 sps:$4 sm:$0xff]   ;;  %s850_s8 = scalar_lea.hbm %s1615_s3, %s966_s18  ;;  %s1220_s11 = scalar_lea.vmem %s853_s5, 384 }
  0x68   : > { %969 = vmatprep.subr.mxu1 %v432_v15  ;;  %565 = vmatprep.mubr.f32.mxu0 %v1506_v28  ;;  %v420_v40 = vunpack.c.l.bf16 %v299_v30  ;;  %v365_v41 = vunpack.c.h.bf16 %v260_v37  ;;  %v372_v44 = vunpack.c.l.bf16 %v267_v35  ;;  %v364_v45 = vunpack.c.l.bf16 %v260_v37  ;;  %v263_v47 = vld [vmem:[%s1488_s29 + $0x68] ss:$12 sps:$4 sm:$0xff]   ;;  %v254_v55 = vld [vmem:[%s1488_s29 + $0x3c] sm:$0xff]  ;;  %v287_v2 = vld [vmem:[%s1488_s29 + $0xf8] ss:$12 sps:$4 sm:$0xff]   ;;  %p1221_p1 = scmp.ne.s32.totalorder %s853_s5, %s1220_s11  ;;  %s1224_s21 = sshll.u32 %s1297_s17, 4  ;;  %s1225_s21 = int_to_ptr.vmem [resolvable:$false] %s1224_s21 }
  0x69   : > { %504 = vmatpush1.xpose.msra.mxu0 %v382_v6  ;;  %v417_v46 = vunpack.c.h.bf16 %v295_v42  ;;  %v362_v48 = vunpack.c.h.bf16 %v258_v43  ;;  %v369_v50 = vunpack.c.h.bf16 %v263_v47  ;;  %v361_v51 = vunpack.c.l.bf16 %v258_v43  ;;  %v259_v59 = vld [vmem:[%s1488_s29 + $0x50] ss:$12 sps:$4 sm:$0xff]   ;;  %v250_v3 = vld [vmem:[%s1488_s29 + $0x24] sm:$0xff]  ;;  %v283_v14 = vld [vmem:[%s1488_s29 + $0xe0] ss:$12 sps:$4 sm:$0xff]   ;;  %s1226_s20 = scalar_lea.vmem %s1225_s21, 768  ;;  %p1227_p7 = scmp.lt.s32.totalorder %s853_s5, %s1225_s21 }
  0x6a   : > { %505 = vmatprep.subr.mxu0 %v380_v7  ;;  %v414_v52 = vunpack.c.l.bf16 %v295_v42  ;;  %v359_v53 = vunpack.c.h.bf16 %v256_v49  ;;  %v366_v56 = vunpack.c.l.bf16 %v263_v47  ;;  %v358_v57 = vunpack.c.l.bf16 %v256_v49  ;;  %v252_v61 = vld [vmem:[%s1488_s29 + $0x30] sm:$0xff]  ;;  %v255_v7 = vld [vmem:[%s1488_s29 + $0x38] ss:$12 sps:$4 sm:$0xff]   ;;  %v304_v35 = vld [vmem:[%s1488_s29 + $0x168] sm:$0xff]  ;;  %p1222_p9 = pnand %p1221_p1, %p1631_p4  ;;  %p1228_p11 = scmp.lt.s32.totalorder %s1226_s20, %s1220_s11 }
  0x6b   : > { %970 = vmatpush3.xpose.msra.mxu1 %v384_v18  ;;  %v411_v58 = vunpack.c.h.bf16 %v291_v54  ;;  %v356_v60 = vunpack.c.h.bf16 %v254_v55  ;;  %v363_v62 = vunpack.c.h.bf16 %v259_v59  ;;  %v355_v63 = vunpack.c.l.bf16 %v254_v55  ;;  %v248_v9 = vld [vmem:[%s1488_s29 + $0x18] sm:$0xff]  ;;  %v246_v15 = vld [vmem:[%s1488_s29 + $0xc] sm:$0xff]  ;;  %v244_v21 = vld [vmem:[%s1488_s29] sm:$0xff] }
  0x6c   : > { %971 = vmatprep.subr.mxu1 %v429_v20  ;;  %v408_v0 = vunpack.c.l.bf16 %v291_v54  ;;  %v353_v1 = vunpack.c.h.bf16 %v252_v61  ;;  %v360_v4 = vunpack.c.l.bf16 %v259_v59  ;;  %v352_v5 = vunpack.c.l.bf16 %v252_v61  ;;  %v300_v47 = vld [vmem:[%s1488_s29 + $0x150] sm:$0xff]  ;;  %v296_v59 = vld [vmem:[%s1488_s29 + $0x138] sm:$0xff]  ;;  %p1223_p2 = pneg %p1222_p9  ;;  %p1229_p5 = por %p1228_p11, %p1227_p7 }
  0x6d   : > { %506 = vmatpush1.xpose.msra.mxu0 %v379_v11  ;;  %v405_v6 = vunpack.c.h.bf16 %v287_v2  ;;  %v350_v8 = vunpack.c.h.bf16 %v250_v3  ;;  %v357_v10 = vunpack.c.h.bf16 %v255_v7  ;;  %v349_v11 = vunpack.c.l.bf16 %v250_v3 }
  0x6e   : > { %507 = vmatprep.subr.mxu0 %v377_v13  ;;  %v402_v12 = vunpack.c.l.bf16 %v287_v2  ;;  %v347_v13 = vunpack.c.h.bf16 %v248_v9  ;;  %v354_v16 = vunpack.c.l.bf16 %v255_v7  ;;  %v346_v17 = vunpack.c.l.bf16 %v248_v9  ;;  %p1230_p0 = pnand %p1229_p5, %p1223_p2 }
  0x6f   : > { %972 = vmatpush3.xpose.msra.mxu1 %v381_v24  ;;  %v399_v18 = vunpack.c.h.bf16 %v283_v14  ;;  %v344_v20 = vunpack.c.h.bf16 %v246_v15  ;;  %v343_v23 = vunpack.c.l.bf16 %v246_v15  ;;  %v396_v24 = vunpack.c.l.bf16 %v283_v14 }
  0x70   : > { %973 = vmatprep.subr.mxu1 %v426_v26  ;;  %v279_v26 = vld [vmem:[%s1488_s29 + $0xc8] ss:$12 sps:$4 sm:$0xff]   ;;  %v340_v31 = vunpack.c.l.bf16 %v244_v21  ;;  %v430_v43 = vunpack.c.l.bf16 %v304_v35  ;;  %v424_v55 = vunpack.c.l.bf16 %v300_v47  ;;  %v418_v2 = vunpack.c.l.bf16 %v296_v59 }
  0x71   : > { %508 = vmatpush1.xpose.msra.mxu0 %v376_v19  ;;  %v251_v19 = vld [vmem:[%s1488_s29 + $0x20] ss:$12 sps:$4 sm:$0xff]  }
  0x72   : > { %509 = vmatprep.subr.mxu0 %v374_v22  ;;  %v351_v22 = vunpack.c.h.bf16 %v251_v19  ;;  %v348_v30 = vunpack.c.l.bf16 %v251_v19 }
  0x73   : > { %974 = vmatpush3.xpose.msra.mxu1 %v378_v32  ;;  %v393_v32 = vunpack.c.h.bf16 %v279_v26 }
  0x74   : > { %975 = vmatprep.subr.mxu1 %v423_v34 }
  0x75   : > { %510 = vmatpush1.xpose.msra.mxu0 %v373_v25  ;;  %v341_v25 = vunpack.c.h.bf16 %v244_v21 }
  0x76   : > { %511 = vmatprep.subr.mxu0 %v371_v29  ;;  %v306_v29 = vld [vmem:[%s1488_s29 + $0x174] sm:$0xff] }
  0x77   : > { %976 = vmatpush3.xpose.msra.mxu1 %v375_v38  ;;  %v434_v34 = vunpack.c.h.bf16 %v306_v29  ;;  %v433_v37 = vunpack.c.l.bf16 %v306_v29  ;;  %v390_v38 = vunpack.c.l.bf16 %v279_v26 }
  0x78   : > { %977 = vmatprep.subr.mxu1 %v420_v40  ;;  %v338_v40 = vld [vmem:[%s1488_s29 + $0x234] sm:$0xff] }
  0x79   : > { %512 = vmatpush1.xpose.msra.mxu0 %v370_v33  ;;  %v247_v33 = vld [vmem:[%s1488_s29 + $0x8] ss:$12 sps:$4 sm:$0xff]  }
  0x7a   : > { %513 = vmatprep.subr.mxu0 %v368_v36  ;;  %v345_v36 = vunpack.c.h.bf16 %v247_v33  ;;  %v342_v42 = vunpack.c.l.bf16 %v247_v33 }
  0x7b   : > { %978 = vmatpush3.xpose.msra.mxu1 %v372_v44  ;;  %v482_v44 = vunpack.c.h.bf16 %v338_v40 }
  0x7c   : > { %979 = vmatprep.subr.mxu1 %v417_v46  ;;  %v336_v46 = vld [vmem:[%s1488_s29 + $0x228] sm:$0xff] }
  0x7d   : > { %514 = vmatpush1.xpose.msra.mxu0 %v367_v39  ;;  %v431_v39 = vunpack.c.h.bf16 %v304_v35  ;;  %v478_v54 = vunpack.c.l.bf16 %v336_v46 }
  0x7e   : > { %515 = vmatprep.subr.mxu0 %v365_v41  ;;  %v302_v41 = vld [vmem:[%s1488_s29 + $0x15c] sm:$0xff] }
  0x7f   : > { %980 = vmatpush3.xpose.msra.mxu1 %v369_v50  ;;  %v427_v49 = vunpack.c.l.bf16 %v302_v41  ;;  %v479_v50 = vunpack.c.h.bf16 %v336_v46 }
  0x80   : > { %981 = vmatprep.subr.mxu1 %v414_v52  ;;  %v334_v52 = vld [vmem:[%s1488_s29 + $0x21c] sm:$0xff] }
  0x81   : > { %516 = vmatpush1.xpose.msra.mxu0 %v364_v45  ;;  %v428_v45 = vunpack.c.h.bf16 %v302_v41 }
  0x82   : > { %517 = vmatprep.subr.mxu0 %v362_v48  ;;  %v481_v48 = vunpack.c.l.bf16 %v338_v40 }
  0x83   : > { %982 = vmatpush3.xpose.msra.mxu1 %v366_v56  ;;  %v476_v56 = vunpack.c.h.bf16 %v334_v52 }
  0x84   : > { %983 = vmatprep.subr.mxu1 %v411_v58  ;;  %v332_v58 = vld [vmem:[%s1488_s29 + $0x210] sm:$0xff] }
  0x85   : > { %518 = vmatpush1.xpose.msra.mxu0 %v361_v51  ;;  %v425_v51 = vunpack.c.h.bf16 %v300_v47 }
  0x86   : > { %519 = vmatprep.subr.mxu0 %v359_v53  ;;  %v298_v53 = vld [vmem:[%s1488_s29 + $0x144] sm:$0xff] }
  0x87   : > { %984 = vmatpush3.xpose.msra.mxu1 %v363_v62  ;;  %v421_v61 = vunpack.c.l.bf16 %v298_v53  ;;  %v473_v62 = vunpack.c.h.bf16 %v332_v58 }
  0x88   : > { %985 = vmatprep.subr.mxu1 %v408_v0  ;;  %v294_v0 = vld [vmem:[%s1488_s29 + $0x12c] sm:$0xff] }
  0x89   : > { %520 = vmatpush1.xpose.msra.mxu0 %v358_v57  ;;  %v422_v57 = vunpack.c.h.bf16 %v298_v53 }
  0x8a   : > { %521 = vmatprep.subr.mxu0 %v356_v60  ;;  %v475_v60 = vunpack.c.l.bf16 %v334_v52 }
  0x8b   : > { %986 = vmatpush3.xpose.msra.mxu1 %v360_v4  ;;  %v416_v4 = vunpack.c.h.bf16 %v294_v0 }
  0x8c   : > { %987 = vmatprep.subr.mxu1 %v405_v6  ;;  %v292_v6 = vld [vmem:[%s1488_s29 + $0x120] sm:$0xff] }
  0x8d   : > { %522 = vmatpush1.xpose.msra.mxu0 %v355_v63  ;;  %v330_v63 = vld [vmem:[%s1488_s29 + $0x204] sm:$0xff]  ;;  %v412_v14 = vunpack.c.l.bf16 %v292_v6 }
  0x8e   : > { %523 = vmatprep.subr.mxu0 %v353_v1  ;;  %v472_v1 = vunpack.c.l.bf16 %v332_v58  ;;  %v470_v3 = vunpack.c.h.bf16 %v330_v63  ;;  %v469_v7 = vunpack.c.l.bf16 %v330_v63 }
  0x8f   : > { %988 = vmatpush3.xpose.msra.mxu1 %v357_v10  ;;  %v413_v10 = vunpack.c.h.bf16 %v292_v6  ;;  %v1295_v6 = vmov 0.0  }
  0x90   : > { %989 = vmatprep.subr.mxu1 %v402_v12  ;;  %v290_v12 = vld [vmem:[%s1488_s29 + $0x114] sm:$0xff] }
  0x91   : > { %524 = vmatpush1.xpose.msra.mxu0 %v352_v5  ;;  %v328_v5 = vld [vmem:[%s1488_s29 + $0x1f8] sm:$0xff] }
  0x92   : > { %525 = vmatprep.subr.mxu0 %v350_v8  ;;  %v415_v8 = vunpack.c.l.bf16 %v294_v0  ;;  %v467_v9 = vunpack.c.h.bf16 %v328_v5  ;;  %v339_v0 = vld [vmem:[%s1488_s29 + $0x230] ss:$12 sps:$4 sm:$0xff]  }
  0x93   : > { %990 = vmatpush3.xpose.msra.mxu1 %v354_v16  ;;  %v410_v16 = vunpack.c.h.bf16 %v290_v12 }
  0x94   : > { %991 = vmatprep.subr.mxu1 %v399_v18  ;;  %v288_v18 = vld [vmem:[%s1488_s29 + $0x108] sm:$0xff] }
  0x95   : > { %526 = vmatpush1.xpose.msra.mxu0 %v349_v11  ;;  %v326_v11 = vld [vmem:[%s1488_s29 + $0x1ec] sm:$0xff]  ;;  %v406_v26 = vunpack.c.l.bf16 %v288_v18 }
  0x96   : > { %527 = vmatprep.subr.mxu0 %v347_v13  ;;  %v466_v13 = vunpack.c.l.bf16 %v328_v5  ;;  %v464_v15 = vunpack.c.h.bf16 %v326_v11  ;;  %v463_v19 = vunpack.c.l.bf16 %v326_v11 }
  0x97   : > { %992 = vmatpush3.xpose.msra.mxu1 %v351_v22  ;;  %v407_v22 = vunpack.c.h.bf16 %v288_v18  ;;  %v323_v18 = vld [vmem:[%s1488_s29 + $0x1d0] ss:$12 sps:$4 sm:$0xff]  }
  0x98   : > { %993 = vmatprep.subr.mxu1 %v396_v24  ;;  %v286_v24 = vld [vmem:[%s1488_s29 + $0xfc] sm:$0xff] }
  0x99   : > { %528 = vmatpush1.xpose.msra.mxu0 %v346_v17  ;;  %v324_v17 = vld [vmem:[%s1488_s29 + $0x1e0] sm:$0xff] }
  0x9a   : > { %529 = vmatprep.subr.mxu0 %v344_v20  ;;  %v409_v20 = vunpack.c.l.bf16 %v290_v12  ;;  %v461_v21 = vunpack.c.h.bf16 %v324_v17  ;;  %v331_v12 = vld [vmem:[%s1488_s29 + $0x200] ss:$12 sps:$4 sm:$0xff]  }
  0x9b   : > { %994 = vmatpush3.xpose.msra.mxu1 %v348_v30  ;;  %v404_v30 = vunpack.c.h.bf16 %v286_v24 }
  0x9c   : > { %995 = vmatprep.subr.mxu1 %v393_v32  ;;  %v284_v32 = vld [vmem:[%s1488_s29 + $0xf0] sm:$0xff] }
  0x9d   : > { %530 = vmatpush1.xpose.msra.mxu0 %v343_v23  ;;  %v322_v23 = vld [vmem:[%s1488_s29 + $0x1d4] sm:$0xff]  ;;  %v400_v40 = vunpack.c.l.bf16 %v284_v32 }
  0x9e   : > { %531 = vmatprep.subr.mxu0 %v341_v25  ;;  %v460_v25 = vunpack.c.l.bf16 %v324_v17  ;;  %v458_v29 = vunpack.c.h.bf16 %v322_v23  ;;  %v457_v33 = vunpack.c.l.bf16 %v322_v23 }
  0x9f   : > { %996 = vmatpush3.xpose.msra.mxu1 %v345_v36  ;;  %v401_v36 = vunpack.c.h.bf16 %v284_v32  ;;  %v486_v32 = vlaneseq }
  0xa0   : > { %997 = vmatprep.subr.mxu1 %v390_v38  ;;  %v282_v38 = vld [vmem:[%s1488_s29 + $0xe4] sm:$0xff] }
  0xa1   : > { %532 = vmatpush1.xpose.msra.mxu0 %v340_v31  ;;  %v320_v31 = vld [vmem:[%s1488_s29 + $0x1c8] sm:$0xff]  ;;  %v397_v46 = vunpack.c.l.bf16 %v282_v38 }
  0xa2   : > { %533 = vmatprep.subr.mxu0 %v434_v34  ;;  %v403_v34 = vunpack.c.l.bf16 %v286_v24  ;;  %v455_v35 = vunpack.c.h.bf16 %v320_v31  ;;  %v315_v24 = vld [vmem:[%s1488_s29 + $0x1a0] ss:$12 sps:$4 sm:$0xff]  }
  0xa3   : > { %998 = vmatpush3.xpose.msra.mxu1 %v342_v42  ;;  %v398_v42 = vunpack.c.h.bf16 %v282_v38 }
  0xa4   : > { %643 = vmatprep.subr.mxu1 %v482_v44  ;;  %v280_v44 = vld [vmem:[%s1488_s29 + $0xd8] sm:$0xff] }
  0xa5   : > { %534 = vmatpush2.xpose.msra.mxu0 %v433_v37  ;;  %v318_v37 = vld [vmem:[%s1488_s29 + $0x1bc] sm:$0xff]  ;;  %v394_v52 = vunpack.c.l.bf16 %v280_v44 }
  0xa6   : > { %535 = vmatprep.subr.mxu0 %v431_v39  ;;  %1000 = vmatmul.mubr.f32.vlgmr.msra.gmra.mxu1 %v1504_v27  ;;  %v454_v39 = vunpack.c.l.bf16 %v320_v31  ;;  %v452_v41 = vunpack.c.h.bf16 %v318_v37 }
  0xa7   : > { %644 = vmatpush1.xpose.msra.mxu1 %v481_v48  ;;  %707 = vmatprep.mubr.f32.mxu1 %v1506_v28  ;;  %v419_v28 = vunpack.c.h.bf16 %v296_v59  ;;  %v395_v48 = vunpack.c.h.bf16 %v280_v44 }
  0xa8   : > { %645 = vmatprep.subr.mxu1 %v479_v50  ;;  %v278_v50 = vld [vmem:[%s1488_s29 + $0xcc] sm:$0xff] }
  0xa9   : > { %536 = vmatpush2.xpose.msra.mxu0 %v430_v43  ;;  %v316_v43 = vld [vmem:[%s1488_s29 + $0x1b0] sm:$0xff]  ;;  %v391_v58 = vunpack.c.l.bf16 %v278_v50 }
  0xaa   : > { %537 = vmatprep.subr.mxu0 %v428_v45  ;;  %v451_v45 = vunpack.c.l.bf16 %v318_v37  ;;  %v449_v47 = vunpack.c.h.bf16 %v316_v43 }
  0xab   : > { %646 = vmatpush1.xpose.msra.mxu1 %v478_v54  ;;  %v392_v54 = vunpack.c.h.bf16 %v278_v50 }
  0xac   : > { %647 = vmatprep.subr.mxu1 %v476_v56  ;;  %v276_v56 = vld [vmem:[%s1488_s29 + $0xc0] sm:$0xff] }
  0xad   : > { %538 = vmatpush2.xpose.msra.mxu0 %v427_v49  ;;  %v314_v49 = vld [vmem:[%s1488_s29 + $0x1a4] sm:$0xff] }
  0xae   : > { %539 = vmatprep.subr.mxu0 %v425_v51  ;;  %v448_v51 = vunpack.c.l.bf16 %v316_v43  ;;  %v446_v53 = vunpack.c.h.bf16 %v314_v49 }
  0xaf   : > { %648 = vmatpush1.xpose.msra.mxu1 %v475_v60  ;;  %v389_v60 = vunpack.c.h.bf16 %v276_v56 }
  0xb0   : > { %649 = vmatprep.subr.mxu1 %v473_v62 }
  0xb1   : > { %540 = vmatpush2.xpose.msra.mxu0 %v424_v55  ;;  %v312_v55 = vld [vmem:[%s1488_s29 + $0x198] sm:$0xff] }
  0xb2   : > { %541 = vmatprep.subr.mxu0 %v422_v57  ;;  %v445_v57 = vunpack.c.l.bf16 %v314_v49  ;;  %v443_v59 = vunpack.c.h.bf16 %v312_v55  ;;  %v442_v62 = vunpack.c.l.bf16 %v312_v55 }
  0xb3   : > { %650 = vmatpush1.xpose.msra.mxu1 %v472_v1  ;;  %v308_v1 = vld [vmem:[%s1488_s29 + $0x180] sm:$0xff] }
  0xb4   : > { %651 = vmatprep.subr.mxu1 %v470_v3  ;;  %v241_v3 = vld [vmem:[#allocation2] sm:$0xff]  ;;  %v437_v5 = vunpack.c.h.bf16 %v308_v1 }
  0xb5   : > { %542 = vmatpush2.xpose.msra.mxu0 %v421_v61  ;;  %v310_v61 = vld [vmem:[%s1488_s29 + $0x18c] sm:$0xff] }
  0xb6   : > { %543 = vmatprep.subr.mxu0 %v419_v28  ;;  %v388_v28 = vunpack.c.l.bf16 %v276_v56  ;;  %v440_v63 = vunpack.c.h.bf16 %v310_v61 }
  0xb7   : > { %652 = vmatpush1.xpose.msra.mxu1 %v469_v7  ;;  %v436_v7 = vunpack.c.l.bf16 %v308_v1 }
  0xb8   : > { %653 = vmatprep.subr.mxu1 %v467_v9  ;;  %v335_v9 = vld [vmem:[%s1488_s29 + $0x218] ss:$12 sps:$4 sm:$0xff]  }
  0xb9   : > { %544 = vmatpush2.xpose.msra.mxu0 %v418_v2  ;;  %v439_v2 = vunpack.c.l.bf16 %v310_v61  ;;  %v474_v11 = vunpack.c.l.bf16 %v335_v9 }
  0xba   : > { %545 = vmatprep.subr.mxu0 %v416_v4  ;;  %v483_v4 = vunpack.c.h.bf16 %v339_v0 }
  0xbb   : > { %654 = vmatpush1.xpose.msra.mxu1 %v466_v13  ;;  %v471_v13 = vunpack.c.h.bf16 %v331_v12 }
  0xbc   : > { %655 = vmatprep.subr.mxu1 %v464_v15  ;;  %v327_v15 = vld [vmem:[%s1488_s29 + $0x1e8] ss:$12 sps:$4 sm:$0xff]  }
  0xbd   : > { %546 = vmatpush2.xpose.msra.mxu0 %v415_v8  ;;  %v480_v8 = vunpack.c.l.bf16 %v339_v0  ;;  %v462_v17 = vunpack.c.l.bf16 %v327_v15 }
  0xbe   : > { %547 = vmatprep.subr.mxu0 %v413_v10  ;;  %v477_v10 = vunpack.c.h.bf16 %v335_v9 }
  0xbf   : > { %656 = vmatpush1.xpose.msra.mxu1 %v463_v19  ;;  %v459_v19 = vunpack.c.h.bf16 %v323_v18 }
  0xc0   : > { %657 = vmatprep.subr.mxu1 %v461_v21  ;;  %v319_v21 = vld [vmem:[%s1488_s29 + $0x1b8] ss:$12 sps:$4 sm:$0xff]  }
  0xc1   : > { %548 = vmatpush2.xpose.msra.mxu0 %v412_v14  ;;  %v468_v14 = vunpack.c.l.bf16 %v331_v12  ;;  %v450_v23 = vunpack.c.l.bf16 %v319_v21 }
  0xc2   : > { %549 = vmatprep.subr.mxu0 %v410_v16  ;;  %v465_v16 = vunpack.c.h.bf16 %v327_v15 }
  0xc3   : > { %658 = vmatpush1.xpose.msra.mxu1 %v460_v25  ;;  %v447_v25 = vunpack.c.h.bf16 %v315_v24 }
  0xc4   : > { %659 = vmatprep.subr.mxu1 %v458_v29  ;;  %v311_v29 = vld [vmem:[%s1488_s29 + $0x188] ss:$12 sps:$4 sm:$0xff]  }
  0xc5   : > { %550 = vmatpush2.xpose.msra.mxu0 %v409_v20  ;;  %v456_v20 = vunpack.c.l.bf16 %v323_v18  ;;  %v438_v31 = vunpack.c.l.bf16 %v311_v29 }
  0xc6   : > { %551 = vmatprep.subr.mxu0 %v407_v22  ;;  %v453_v22 = vunpack.c.h.bf16 %v319_v21 }
  0xc7   : > { %660 = vmatpush1.xpose.msra.mxu1 %v457_v33  ;;  %v487_v33 = vshrl.u32 %v486_v32, 7 }
  0xc8   : > { %661 = vmatprep.subr.mxu1 %v455_v35  ;;  %v484_v35 = vld [vmem:[%s210_s26] sm:$0x7] }
  0xc9   : > { %552 = vmatpush2.xpose.msra.mxu0 %v406_v26  ;;  %v444_v26 = vunpack.c.l.bf16 %v315_v24 }
  0xca   : > { %553 = vmatprep.subr.mxu0 %v404_v30  ;;  %v441_v30 = vunpack.c.h.bf16 %v311_v29 }
  0xcb   : > { %662 = vmatpush1.xpose.msra.mxu1 %v454_v39 }
  0xcc   : > { %663 = vmatprep.subr.mxu1 %v452_v41 }
  0xcd   : > { %554 = vmatpush2.xpose.msra.mxu0 %v403_v34  ;;  %v488_v34 = vsub.s32 0, %v487_v33 }
  0xce   : > { %555 = vmatprep.subr.mxu0 %v401_v36  ;;  %v492_v36 = vsub.s32 1, %v487_v33 }
  0xcf   : > { %664 = vmatpush1.xpose.msra.mxu1 %v451_v45  ;;  %v489_v37 = vrot.slane %v484_v35, %v488_v34 }
  0xd0   : > { %665 = vmatprep.subr.mxu1 %v449_v47  ;;  %v493_v38 = vrot.slane %v484_v35, %v492_v36 }
  0xd1   : > { %556 = vmatpush2.xpose.msra.mxu0 %v400_v40 }
  0xd2   : > { %557 = vmatprep.subr.mxu0 %v398_v42 }
  0xd3   : > { %666 = vmatpush1.xpose.msra.mxu1 %v448_v51 }
  0xd4   : > { %667 = vmatprep.subr.mxu1 %v446_v53 }
  0xd5   : > { %558 = vmatpush2.xpose.msra.mxu0 %v397_v46 }
  0xd6   : > { %559 = vmatprep.subr.mxu0 %v395_v48 }
  0xd7   : > { %668 = vmatpush1.xpose.msra.mxu1 %v445_v57 }
  0xd8   : > { %669 = vmatprep.subr.mxu1 %v443_v59 }
  0xd9   : > { %560 = vmatpush2.xpose.msra.mxu0 %v394_v52 }
  0xda   : > { %561 = vmatprep.subr.mxu0 %v392_v54 }
  0xdb   : > { %670 = vmatpush1.xpose.msra.mxu1 %v442_v62 }
  0xdc   : > { %671 = vmatprep.subr.mxu1 %v440_v63 }
  0xdd   : > { %562 = vmatpush2.xpose.msra.mxu0 %v391_v58 }
  0xde   : > { %563 = vmatprep.subr.mxu0 %v389_v60 }
  0xdf   : > { %672 = vmatpush1.xpose.msra.mxu1 %v439_v2 }
  0xe0   : > { %673 = vmatprep.subr.mxu1 %v437_v5 }
  0xe1   : > { %564 = vmatpush2.xpose.msra.mxu0 %v388_v28 }
  0xe2   : > { %1018 = vmatprep.subr.mxu0 %v1295_v6 }
  0xe3   : > { %674 = vmatpush1.xpose.msra.mxu1 %v436_v7 }
  0xe4   : > { %566 = vmatmul.mubr.f32.vlgmr.msra.gmra.mxu0 %v241_v3 }
  0xe5   : > { %1019 = vmatpush3.xpose.msra.mxu0 %v483_v4  ;;  %1050 = vmatprep.mubr.msk.f32.mxu0 %vm1296_vm0, %v1295_v6 }
  0xe6   : > { %1020 = vmatprep.subr.mxu0 %v1295_v6  ;;  %708 = vmatmul.mubr.f32.vlgmr.msra.gmra.mxu1 %v241_v3 }
  0xe9   : > { %1021 = vmatpush3.xpose.msra.mxu0 %v480_v8 }
  0xea   : > { %1022 = vmatprep.subr.mxu0 %v1295_v6 }
  0xed   : > { %1023 = vmatpush3.xpose.msra.mxu0 %v477_v10 }
  0xee   : > { %1024 = vmatprep.subr.mxu0 %v1295_v6 }
  0xf1   : > { %1025 = vmatpush3.xpose.msra.mxu0 %v474_v11 }
  0xf2   : > { %1026 = vmatprep.subr.mxu0 %v1295_v6 }
  0xf5   : > { %1027 = vmatpush3.xpose.msra.mxu0 %v471_v13  ;;  %v496_v13 = vsub.s32 2, %v487_v33 }
  0xf6   : > { %1028 = vmatprep.subr.mxu0 %v1295_v6 }
  0xf9   : > { %1029 = vmatpush3.xpose.msra.mxu0 %v468_v14  ;;  %v497_v14 = vrot.slane %v484_v35, %v496_v13 }
  0xfa   : > { %1030 = vmatprep.subr.mxu0 %v1295_v6 }
  0xfd   : > { %1031 = vmatpush3.xpose.msra.mxu0 %v465_v16 }
  0xfe   : > { %1032 = vmatprep.subr.mxu0 %v1295_v6 }
 0x101   : > { %1033 = vmatpush3.xpose.msra.mxu0 %v462_v17 }
 0x102   : > { %1034 = vmatprep.subr.mxu0 %v1295_v6 }
 0x105   : > { %1035 = vmatpush3.xpose.msra.mxu0 %v459_v19 }
 0x106   : > { %1036 = vmatprep.subr.mxu0 %v1295_v6 }
 0x109   : > { %1037 = vmatpush3.xpose.msra.mxu0 %v456_v20 }
 0x10a   : > { %1038 = vmatprep.subr.mxu0 %v1295_v6 }
 0x10d   : > { %1039 = vmatpush3.xpose.msra.mxu0 %v453_v22 }
 0x10e   : > { %1040 = vmatprep.subr.mxu0 %v1295_v6 }
 0x111   : > { %1041 = vmatpush3.xpose.msra.mxu0 %v450_v23 }
 0x112   : > { %1042 = vmatprep.subr.mxu0 %v1295_v6 }
 0x115   : > { %1043 = vmatpush3.xpose.msra.mxu0 %v447_v25 }
 0x116   : > { %1044 = vmatprep.subr.mxu0 %v1295_v6 }
 0x119   : > { %1045 = vmatpush3.xpose.msra.mxu0 %v444_v26 }
 0x11a   : > { %1046 = vmatprep.subr.mxu0 %v1295_v6 }
 0x11d   : > { %1047 = vmatpush3.xpose.msra.mxu0 %v441_v30 }
 0x11e   : > { %1048 = vmatprep.subr.mxu0 %v1295_v6 }
 0x121   : > { %1049 = vmatpush3.xpose.msra.mxu0 %v438_v31 }
 0x124   : > { %1051 = vmatmul.mubr.f32.vlgmr.msra.gmra.mxu0 %v1504_v27 }
 0x166   : > { %v638_v39 = vpop.f32.mrf.mxu1 }
 0x168   : > { %v640_v45 = vpop.f32.mrf.mxu1 }
 0x1a4   : > { %v567_v40 = vpop.f32.mrf.mxu0 }
 0x1a5   : > { %v568_v41 = vadd.f32 %v567_v40, %v489_v37 }
 0x1a6   : > { %v569_v42 = vpop.f32.mrf.mxu0  ;;  %v709_v49 = vpop.f32.mrf.mxu1 }
 0x1a7   : > { %v639_v43 = vadd.f32 %v638_v39, %v568_v41  ;;  %v570_v44 = vadd.f32 %v569_v42, %v493_v38  ;;  %v710_v16 = vadd.f32 %v709_v49, %v497_v14 }
 0x1a8   : > { %v711_v52 = vpop.f32.mrf.mxu1 }
 0x1a9   : > { %v783_v46 = vrot.slane %v639_v43, 4  ;;  %v641_v47 = vadd.f32 %v640_v45, %v570_v44 }
 0x1ab   : > { %v784_v48 = vmax.f32 %v639_v43, %v783_v46  ;;  %v789_v27 = vrot.slane %v641_v47, 4 }
 0x1ad   : > { %v785_v50 = vrot.slane %v784_v48, 2  ;;  %v790_v51 = vmax.f32 %v641_v47, %v789_v27 }
 0x1af   : > { %v786_v53 = vmax.f32 %v784_v48, %v785_v50  ;;  %v791_v54 = vrot.slane %v790_v51, 2 }
 0x1b1   : > { %v787_v55 = vrot.slane %v786_v53, 1  ;;  %v792_v56 = vmax.f32 %v790_v51, %v791_v54 }
 0x1b3   : > { %v788_v57 = vmax.f32 %v786_v53, %v787_v55  ;;  %v793_v58 = vrot.slane %v792_v56, 1 }
 0x1b5   : > { %v801_v59 = vsub.f32 %v639_v43, %v788_v57  ;;  %v794_v60 = vmax.f32 %v792_v56, %v793_v58 }
 0x1b7   : > { %v804_v61 = vmul.f32 1.442695, %v801_v59  ;;  %v802_v62 = vsub.f32 %v641_v47, %v794_v60 }
 0x1b9   : > { %1126 = vpow2.f32 %v804_v61  ;;  %v806_v28 = vmul.f32 1.442695, %v802_v62 }
 0x1bb   : > { %1128 = vpow2.f32 %v806_v28 }
 0x1c6   : > { %v1127_v63 = vpop.eup %1126 }
 0x1c7   : > { %v810_v0 = vrot.slane %v1127_v63, 4 }
 0x1c8   : > { %v1129_v1 = vpop.eup %1128 }
 0x1c9   : > { %v811_v2 = vadd.f32 %v1127_v63, %v810_v0  ;;  %v816_v3 = vrot.slane %v1129_v1, 4 }
 0x1cb   : > { %v812_v4 = vrot.slane %v811_v2, 2  ;;  %v817_v5 = vadd.f32 %v1129_v1, %v816_v3 }
 0x1cd   : > { %v813_v6 = vadd.f32 %v812_v4, %v811_v2  ;;  %v818_v7 = vrot.slane %v817_v5, 2 }
 0x1cf   : > { %v814_v8 = vrot.slane %v813_v6, 1  ;;  %v819_v9 = vadd.f32 %v818_v7, %v817_v5 }
 0x1d1   : > { %v815_v10 = vadd.f32 %v814_v8, %v813_v6  ;;  %v820_v11 = vrot.slane %v819_v9, 1 }
 0x1d3   : > { %v821_v12 = vadd.f32 %v820_v11, %v819_v9  ;;  %1130 = vrcp.f32 %v815_v10 }
 0x1d5   : > { %1132 = vrcp.f32 %v821_v12 }
 0x1e0   : > { %v1131_v15 = vpop.eup %1130 }
 0x1e1   : > { %v829_v17 = vmul.f32 %v1131_v15, %v1127_v63 }
 0x1e2   : > { %v1133_v18 = vpop.eup %1132 }
 0x1e3   : > { %v831_v19 = vmul.f32 %v1133_v18, %v1129_v1  ;;  %834 = vst [vmem:[%s237_s10] sm:$0xff] %v829_v17 }
 0x1e4   : > { %v779_v20 = vpop.f32.mrf.mxu0 }
 0x1e5   : > { %v780_v21 = vadd.f32 %v779_v20, %v710_v16  ;;  %835 = vst [vmem:[%s237_s10 + $0x8] sm:$0xff] %v831_v19 }
 0x1e6   : > { %v1052_v22 = vpop.f32.mrf.mxu0 }
 0x1e7   : > { %v795_v23 = vrot.slane %v780_v21, 4 }
 0x1e9   : > { %v796_v24 = vmax.f32 %v780_v21, %v795_v23 }
 0x1eb   : > { %v797_v25 = vrot.slane %v796_v24, 2 }
 0x1ed   : > { %v798_v26 = vmax.f32 %v796_v24, %v797_v25 }
 0x1ef   : > { %v799_v29 = vrot.slane %v798_v26, 1 }
 0x1f1   : > { %v800_v30 = vmax.f32 %v798_v26, %v799_v29 }
 0x1f3   : > { %v803_v31 = vsub.f32 %v780_v21, %v800_v30 }
 0x1f5   : > { %v808_v32 = vmul.f32 1.442695, %v803_v31 }
 0x1f7   : > { %1134 = vpow2.f32 %v808_v32 }
 0x204   : > { %v1135_v33 = vpop.eup %1134 }
 0x205   : > { %v822_v34 = vrot.slane %v1135_v33, 4 }
 0x207   : > { %v823_v35 = vadd.f32 %v1135_v33, %v822_v34 }
 0x209   : > { %v824_v36 = vrot.slane %v823_v35, 2 }
 0x20b   : > { %v825_v37 = vadd.f32 %v824_v36, %v823_v35 }
 0x20d   : > { %v826_v38 = vrot.slane %v825_v37, 1 }
 0x20f   : > { %v827_v39 = vadd.f32 %v826_v38, %v825_v37 }
 0x211   : > { %1136 = vrcp.f32 %v827_v39 }
 0x21e   : > { %v1137_v40 = vpop.eup %1136 }
 0x21f   : > { %v833_v41 = vmul.f32 %v1137_v40, %v1135_v33 }
 0x221   : > { %836 = vst [vmem:[%s237_s10 + $0x10] sm:$0xff] %v833_v41 }
 0x222   : > { %1233 = shalt.err (!%p1230_p0)
}
 0x223   : > { %s1234_s24 = scalar_lea.hbm %s850_s8, 384  ;;  %s1238_s25 = scalar_lea.hbm %s1615_s3, 768 }
 0x224   : > { %p1235_p3 = scmp.ne.s32.totalorder %s850_s8, %s1234_s24  ;;  %p1239_p13 = scmp.lt.s32.totalorder %s850_s8, %s1615_s3 }
 0x225   : > { %p1240_p10 = scmp.lt.s32.totalorder %s1238_s25, %s1234_s24 }
 0x226   : > { %p1236_p12 = pnand %p1235_p3, %p1631_p4 }
 0x227   : > { %p1241_p6 = por %p1240_p10, %p1239_p13 }
 0x228   : > { %p1237_p8 = pneg %p1236_p12 }
 0x22a   : > { %p1242_p1 = pnand %p1241_p6, %p1237_p8 }
 0x22c   : > { %1245 = shalt.err (!%p1242_p1)
}
 0x22d   : > { %1067 = dma.vmem_to_hbm [thread:$0]  (%p1631_p4), %s853_s5, 384, %s850_s8, %s838_s6  }
 0x22e PF: > { %s864_s26 = sand.u32 1, %s1276_s12   ;;  %p1632_p9 = scmp.ne.s32.totalorder %s1623_s28, 0 }
 0x22f   : > { %p1633_p2 = scmp.ge.s32.totalorder %s1288_s15, 2  ;;  %s865_s4 = scalar_lea.sflag [#allocation4], %s864_s26 }
 0x231   : > { %p1081_p7 = pnand %p1633_p2, %p1632_p9 }
 0x233   : > { %p1082_p11 = pneg %p1081_p7 }
 0x235   : > { %1271 = dma.done.wait (%p1082_p11), %s865_s4, 384  }
 0x236   : > { %1273 = vsyncadd (%p1082_p11), %s865_s4, 4294966912  ;;  %p17_p5 = scmp.ge.s32.totalorder %s1339_s16, 4   ;;  %s1634_s12 = smov %s1280_s13 }
 0x237   : > { %s1635_s13 = smov %s1284_s14  ;;  %s1636_s14 = smov %s1350_s19 }
 0x238   : > { %s1637_s15 = smov %s1339_s16  ;;  %19 = sbr.rel (!%p17_p5) target bundleno = 6 (0x6), region = 93 }
 0x23d   :  { %870 = vsyncpa [#allocation3], 1 }
 0x23e   :  { %872 = vsyncpa [#allocation3 + $0x1], 1 }
 0x23f   :  { %873 = vsyncpa [#allocation6], 1 }
 0x240   :  { %875 = vsyncpa [#allocation6 + $0x1], 1 }
 0x241   :  { %876 = vsyncpa [#allocation4], 1 }
 0x242   :  { %878 = vsyncpa [#allocation4 + $0x1], 1 }

</bundles_post_ra>
